<compile_context>
chip_gen: v6e
topology: v6e:2x2x1
jax: 0.10.0
libtpu: 0.0.40
codegen_flags: <defaults>
</compile_context>

<pallas_src>
import jax
import jax.numpy as jnp
from jax.experimental import pallas as pl
from jax.experimental.pallas import tpu as pltpu


def _round_up(x, m):
    return ((x + m - 1) // m) * m


# --------------------------------------------------------------------------
# Kernel: one batch tile of the fully fused 3-layer MLP.
# --------------------------------------------------------------------------
def decoder_kernel(z_ref, w1_ref, b1_ref, w2_ref, b2_ref, w3_ref, b3_ref, out_ref):
    # Layer 1: Linear(latent -> hidden) + ReLU   (f32 MXU accumulation)
    h1 = jnp.dot(z_ref[...], w1_ref[...], preferred_element_type=jnp.float32)
    h1 = jnp.maximum(h1 + b1_ref[...], 0.0)
    # Layer 2: Linear(hidden -> hidden) + ReLU
    h2 = jnp.dot(h1.astype(w2_ref.dtype), w2_ref[...],
                 preferred_element_type=jnp.float32)
    h2 = jnp.maximum(h2 + b2_ref[...], 0.0)
    # Layer 3: Linear(hidden -> out) + Tanh      (epilogue stays f32)
    h3 = jnp.dot(h2.astype(w3_ref.dtype), w3_ref[...],
                 preferred_element_type=jnp.float32)
    out_ref[...] = jnp.tanh(h3 + b3_ref[...]).astype(out_ref.dtype)


# --------------------------------------------------------------------------
# One-time parameter preparation (pad + cast).  Call once, reuse per forward.
# --------------------------------------------------------------------------
def prepare_decoder_params(params, *, compute_dtype=jnp.float32):
    """Pad hidden/output dims to lane-dense multiples and cast weights once.

    Returns (prepared_arrays, meta).  `prepared_arrays` should be reused across
    forward calls (memoize on parameter identity in a training loop).
    """
    w1, b1, w2, b2, w3, b3 = params
    latent_dim, hidden_dim = w1.shape
    output_dim = w3.shape[1]

    cd = jnp.dtype(compute_dtype)
    # 256 fills a full v6e/v7x 256x256 MXU pass for sub-32-bit inputs;
    # 128 (the lane width) for f32.
    lane = 256 if cd.itemsize < 4 else 128
    hidden_p = _round_up(hidden_dim, lane)
    out_p = _round_up(output_dim, lane)

    def pad_w(w, rows, cols):
        return (jnp.zeros((rows, cols), cd)
                .at[: w.shape[0], : w.shape[1]].set(w.astype(cd)))

    def pad_b(b, n):
        return (jnp.zeros((1, n), jnp.float32)
                .at[0, : b.shape[0]].set(b.astype(jnp.float32)))

    prepared = (
        pad_w(w1, latent_dim, hidden_p),   # (latent, hidden_p)
        pad_b(b1, hidden_p),               # (1, hidden_p) f32
        pad_w(w2, hidden_p, hidden_p),     # (hidden_p, hidden_p)
        pad_b(b2, hidden_p),
        pad_w(w3, hidden_p, out_p),        # (hidden_p, out_p)
        pad_b(b3, out_p),
    )
    meta = dict(latent_dim=latent_dim, hidden_dim=hidden_dim,
                output_dim=output_dim, hidden_p=hidden_p, out_p=out_p,
                compute_dtype=cd)
    return prepared, meta


def _pick_batch_tile(B, max_batch_tile, sublane):
    if B <= sublane:
        return sublane
    if B <= 2 * max_batch_tile:
        # >= 2 grid steps so v7x's two TensorCores can split the parallel
        # batch axis; costs only one extra ~0.35us step on 1-TC chips.
        return _round_up(-(-B // 2), sublane)
    return max_batch_tile


def _run_pallas(z_p, prepared, *, batch_tile, latent_dim, hidden_p, out_p,
                out_dtype, vmem_limit, cost, single_buffer_weights):
    w1_p, b1_p, w2_p, b2_p, w3_p, b3_p = prepared
    B_p = z_p.shape[0]
    grid = (B_p // batch_tile,)

    def const_spec(shape):
        if single_buffer_weights:
            # Weights never change across batch tiles: keep them VMEM-resident
            # without the default double-buffer footprint.
            return pl.BlockSpec(shape, lambda i: (0, 0),
                                pipeline_mode=pl.Buffered(1))
        return pl.BlockSpec(shape, lambda i: (0, 0))

    return pl.pallas_call(
        decoder_kernel,
        out_shape=jax.ShapeDtypeStruct((B_p, out_p), out_dtype),
        grid_spec=pltpu.PrefetchScalarGridSpec(
            num_scalar_prefetch=0,
            grid=grid,
            in_specs=[
                # z tile: last dim = full latent extent (kept unpadded; padding
                # latent to 128 would multiply z HBM traffic for little gain).
                pl.BlockSpec((batch_tile, latent_dim), lambda i: (i, 0)),
                const_spec((latent_dim, hidden_p)),   # w1 (resident)
                const_spec((1, hidden_p)),            # b1 (f32)
                const_spec((hidden_p, hidden_p)),     # w2 (resident)
                const_spec((1, hidden_p)),            # b2 (f32)
                const_spec((hidden_p, out_p)),        # w3 (resident, padded)
                const_spec((1, out_p)),               # b3 (f32, padded)
            ],
            out_specs=pl.BlockSpec((batch_tile, out_p), lambda i: (i, 0)),
        ),
        compiler_params=pltpu.CompilerParams(
            dimension_semantics=("parallel",),
            vmem_limit_bytes=vmem_limit,
        ),
        cost_estimate=cost,
    )(z_p, w1_p, b1_p, w2_p, b2_p, w3_p, b3_p)


# --------------------------------------------------------------------------
# Forward wrapper.
# --------------------------------------------------------------------------
def decoder_forward(z, prepared, meta, *, max_batch_tile=512,
                    out_dtype=jnp.float32):
    """Fused Decoder MLP forward.  `prepared, meta` from prepare_decoder_params."""
    latent_dim = meta["latent_dim"]
    output_dim = meta["output_dim"]
    hidden_p = meta["hidden_p"]
    out_p = meta["out_p"]
    cd = meta["compute_dtype"]

    B = z.shape[0]
    assert z.shape[1] == latent_dim
    z = z.astype(cd)

    cdsize = cd.itemsize
    odsize = jnp.dtype(out_dtype).itemsize
    sublane = max(8, 32 // cdsize)          # 8 for f32, 16 for bf16, 32 for int8

    batch_tile = _pick_batch_tile(B, max_batch_tile, sublane)
    B_p = _round_up(B, batch_tile)
    z_p = z if B_p == B else jnp.zeros((B_p, latent_dim), z.dtype).at[:B, :].set(z)

    # VMEM budget: single-buffered weights + f32 biases + double-buffered
    # z/out tiles + f32 intermediates (may spill past vregs); 1.5x headroom.
    weight_bytes = (latent_dim * hidden_p + hidden_p * hidden_p
                    + hidden_p * out_p) * cdsize
    bias_bytes = (2 * hidden_p + out_p) * 4
    io_bytes = 2 * batch_tile * (latent_dim * cdsize + out_p * odsize)
    act_bytes = batch_tile * (2 * hidden_p + out_p) * 4
    vmem_limit = int(1.5 * (weight_bytes + bias_bytes + io_bytes + act_bytes)) + (4 << 20)
    vmem_limit = min(max(vmem_limit, 32 << 20), 100 << 20)

    cost = pl.CostEstimate(
        flops=2 * B_p * (latent_dim * hidden_p + hidden_p * hidden_p
                         + hidden_p * out_p),
        transcendentals=B_p * out_p,
        bytes_accessed=(B_p * latent_dim * cdsize + weight_bytes + bias_bytes
                        + B_p * out_p * odsize),
    )

    kwargs = dict(batch_tile=batch_tile, latent_dim=latent_dim,
                  hidden_p=hidden_p, out_p=out_p, out_dtype=out_dtype,
                  vmem_limit=vmem_limit, cost=cost)
    try:
        out_padded = _run_pallas(z_p, prepared, single_buffer_weights=True, **kwargs)
    except Exception:
        # Fallback for jax versions where pipeline_mode=pl.Buffered(1) is not
        # supported; default (double-buffered) weight blocks are still correct.
        out_padded = _run_pallas(z_p, prepared, single_buffer_weights=False, **kwargs)

    return out_padded[:B, :output_dim]


# --------------------------------------------------------------------------
# Init + pure-JAX reference (mirrors the PyTorch module).
# --------------------------------------------------------------------------
def init_params(key, latent_dim, hidden_dim, output_dim, dtype=jnp.float32):
    """Deterministic parameter init (PyTorch-like uniform fan-in scaling)."""
    ks = jax.random.split(key, 6)

    def linear(kw, kb, fan_in, fan_out):
        bound = 1.0 / jnp.sqrt(fan_in)
        w = jax.random.uniform(kw, (fan_in, fan_out), dtype, -bound, bound)  # (in, out)
        b = jax.random.uniform(kb, (fan_out,), dtype, -bound, bound)
        return w, b

    w1, b1 = linear(ks[0], ks[1], latent_dim, hidden_dim)
    w2, b2 = linear(ks[2], ks[3], hidden_dim, hidden_dim)
    w3, b3 = linear(ks[4], ks[5], hidden_dim, output_dim)
    return (w1, b1, w2, b2, w3, b3)


def decoder_ref(z, params):
    w1, b1, w2, b2, w3, b3 = params
    h = jnp.maximum(z @ w1 + b1, 0.0)
    h = jnp.maximum(h @ w2 + b2, 0.0)
    return jnp.tanh(h @ w3 + b3)


if __name__ == "__main__":
    latent_dim, hidden_dim, output_dim = 16, 32, 64
    batch = 16

    key = jax.random.PRNGKey(0)
    k_z, k_p = jax.random.split(key)

    z = jax.random.normal(k_z, (batch, latent_dim), dtype=jnp.float32)
    params = init_params(k_p, latent_dim, hidden_dim, output_dim)
    ref = decoder_ref(z, params)

    # f32 path: padded/cast weights prepared ONCE and reused across calls.
    prep_f32, meta_f32 = prepare_decoder_params(params, compute_dtype=jnp.float32)
    out = jax.block_until_ready(decoder_forward(z, prep_f32, meta_f32))
    assert out.shape == (batch, output_dim)
    assert jnp.allclose(out, ref, atol=1e-5, rtol=1e-5), "f32 mismatch vs reference"

    # bf16 matmul inputs (valid on v5e/v6e/v7x MXU), f32 accumulation + f32
    # epilogue, bf16 lane-dense output writeback.  Note: z/h1/h2 are bf16, so
    # rounding error compounds over three layers (covered by 5e-2 tolerance).
    prep_bf16, meta_bf16 = prepare_decoder_params(params, compute_dtype=jnp.bfloat16)
    out_bf16 = jax.block_until_ready(
        decoder_forward(z, prep_bf16, meta_bf16, out_dtype=jnp.bfloat16))
    assert out_bf16.shape == (batch, output_dim)
    assert jnp.allclose(out_bf16.astype(jnp.float32), ref, atol=5e-2, rtol=5e-2), \
        "bf16 mismatch vs reference"

    # Larger, non-aligned batch: exercises batch padding + multi-step parallel grid.
    z_big = jax.random.normal(k_z, (300, latent_dim), dtype=jnp.float32)
    out_big = jax.block_until_ready(
        decoder_forward(z_big, prep_f32, meta_f32, max_batch_tile=128))
    assert out_big.shape == (300, output_dim)
    assert jnp.allclose(out_big, decoder_ref(z_big, params), atol=1e-5, rtol=1e-5), \
        "tiled-batch mismatch vs reference"

    print("KERNEL_OK")
</pallas_src>

<mosaic_0001>
module attributes {stable_mosaic.version = 11 : i64} {
  func.func @decoder_kernel(%arg0: i32, %arg1: memref<8x16xf32, #tpu.memory_space<vmem>>, %arg2: memref<16x128xf32, #tpu.memory_space<vmem>>, %arg3: memref<1x128xf32, #tpu.memory_space<vmem>>, %arg4: memref<128x128xf32, #tpu.memory_space<vmem>>, %arg5: memref<1x128xf32, #tpu.memory_space<vmem>>, %arg6: memref<128x128xf32, #tpu.memory_space<vmem>>, %arg7: memref<1x128xf32, #tpu.memory_space<vmem>>, %arg8: memref<8x128xf32, #tpu.memory_space<vmem>>) attributes {dimension_semantics = [#tpu.dimension_semantics<parallel>], iteration_bounds = array<i64: 2>, scalar_prefetch = 0 : i64, scratch_operands = 0 : i64, tpu.core_type = #tpu.core_type<tc>, window_params = [{transform_indices = @transform_0, window_bounds = array<i64: 8, 16>}, {pipeline_mode = #tpu.pipeline_mode<synchronous>, transform_indices = @transform_1, window_bounds = array<i64: 16, 128>}, {pipeline_mode = #tpu.pipeline_mode<synchronous>, transform_indices = @transform_2, window_bounds = array<i64: 1, 128>}, {pipeline_mode = #tpu.pipeline_mode<synchronous>, transform_indices = @transform_3, window_bounds = array<i64: 128, 128>}, {pipeline_mode = #tpu.pipeline_mode<synchronous>, transform_indices = @transform_4, window_bounds = array<i64: 1, 128>}, {pipeline_mode = #tpu.pipeline_mode<synchronous>, transform_indices = @transform_5, window_bounds = array<i64: 128, 128>}, {pipeline_mode = #tpu.pipeline_mode<synchronous>, transform_indices = @transform_6, window_bounds = array<i64: 1, 128>}, {transform_indices = @transform_7, window_bounds = array<i64: 8, 128>}]} {
    %c0 = arith.constant 0 : index
    %c0_0 = arith.constant 0 : index
    %0 = vector.load %arg1[%c0, %c0_0] : memref<8x16xf32, #tpu.memory_space<vmem>>, vector<8x16xf32>
    %c0_1 = arith.constant 0 : index
    %c0_2 = arith.constant 0 : index
    %1 = vector.load %arg2[%c0_1, %c0_2] : memref<16x128xf32, #tpu.memory_space<vmem>>, vector<16x128xf32>
    %cst = arith.constant dense<0.000000e+00> : vector<8x128xf32>
    %2 = tpu.matmul %0, %1, %cst {dimension_numbers = #tpu.dot_dimension_numbers<[1], [0], [0], [1], [0, 0, 1, 1], [], []>} : vector<8x16xf32>, vector<16x128xf32>, vector<8x128xf32> -> vector<8x128xf32>
    %c0_3 = arith.constant 0 : index
    %c0_4 = arith.constant 0 : index
    %3 = vector.load %arg3[%c0_3, %c0_4] : memref<1x128xf32, #tpu.memory_space<vmem>>, vector<1x128xf32>
    %4 = vector.broadcast %3 : vector<1x128xf32> to vector<8x128xf32>
    %5 = arith.addf %2, %4 : vector<8x128xf32>
    %cst_5 = arith.constant 0.000000e+00 : f32
    %6 = vector.broadcast %cst_5 : f32 to vector<8x128xf32>
    %7 = arith.maximumf %5, %6 : vector<8x128xf32>
    %c0_6 = arith.constant 0 : index
    %c0_7 = arith.constant 0 : index
    %8 = vector.load %arg4[%c0_6, %c0_7] : memref<128x128xf32, #tpu.memory_space<vmem>>, vector<128x128xf32>
    %cst_8 = arith.constant dense<0.000000e+00> : vector<8x128xf32>
    %9 = tpu.matmul %7, %8, %cst_8 {dimension_numbers = #tpu.dot_dimension_numbers<[1], [0], [0], [1], [0, 0, 1, 1], [], []>} : vector<8x128xf32>, vector<128x128xf32>, vector<8x128xf32> -> vector<8x128xf32>
    %c0_9 = arith.constant 0 : index
    %c0_10 = arith.constant 0 : index
    %10 = vector.load %arg5[%c0_9, %c0_10] : memref<1x128xf32, #tpu.memory_space<vmem>>, vector<1x128xf32>
    %11 = vector.broadcast %10 : vector<1x128xf32> to vector<8x128xf32>
    %12 = arith.addf %9, %11 : vector<8x128xf32>
    %cst_11 = arith.constant 0.000000e+00 : f32
    %13 = vector.broadcast %cst_11 : f32 to vector<8x128xf32>
    %14 = arith.maximumf %12, %13 : vector<8x128xf32>
    %c0_12 = arith.constant 0 : index
    %c0_13 = arith.constant 0 : index
    %15 = vector.load %arg6[%c0_12, %c0_13] : memref<128x128xf32, #tpu.memory_space<vmem>>, vector<128x128xf32>
    %cst_14 = arith.constant dense<0.000000e+00> : vector<8x128xf32>
    %16 = tpu.matmul %14, %15, %cst_14 {dimension_numbers = #tpu.dot_dimension_numbers<[1], [0], [0], [1], [0, 0, 1, 1], [], []>} : vector<8x128xf32>, vector<128x128xf32>, vector<8x128xf32> -> vector<8x128xf32>
    %c0_15 = arith.constant 0 : index
    %c0_16 = arith.constant 0 : index
    %17 = vector.load %arg7[%c0_15, %c0_16] : memref<1x128xf32, #tpu.memory_space<vmem>>, vector<1x128xf32>
    %18 = vector.broadcast %17 : vector<1x128xf32> to vector<8x128xf32>
    %19 = arith.addf %16, %18 : vector<8x128xf32>
    %20 = math.tanh %19 : vector<8x128xf32>
    %c0_17 = arith.constant 0 : index
    %c0_18 = arith.constant 0 : index
    %21 = vector.load %arg8[%c0_17, %c0_18] : memref<8x128xf32, #tpu.memory_space<vmem>>, vector<8x128xf32>
    tpu.vector_store %arg8[%c0_17, %c0_18], %20 {strides = array<i32>} : memref<8x128xf32, #tpu.memory_space<vmem>>, vector<8x128xf32>,
    return
  }
  func.func @transform_0(%arg0: i32) -> (i32, i32) {
    %c0_i32 = arith.constant 0 : i32
    %c0_i32_0 = arith.constant 0 : i32
    return %arg0, %c0_i32 : i32, i32
  }
  func.func @transform_1(%arg0: i32) -> (i32, i32) {
    %c0_i32 = arith.constant 0 : i32
    %c0_i32_0 = arith.constant 0 : i32
    %c0_i32_1 = arith.constant 0 : i32
    return %c0_i32, %c0_i32_0 : i32, i32
  }
  func.func @transform_2(%arg0: i32) -> (i32, i32) {
    %c0_i32 = arith.constant 0 : i32
    %c0_i32_0 = arith.constant 0 : i32
    %c0_i32_1 = arith.constant 0 : i32
    return %c0_i32, %c0_i32_0 : i32, i32
  }
  func.func @transform_3(%arg0: i32) -> (i32, i32) {
    %c0_i32 = arith.constant 0 : i32
    %c0_i32_0 = arith.constant 0 : i32
    %c0_i32_1 = arith.constant 0 : i32
    return %c0_i32, %c0_i32_0 : i32, i32
  }
  func.func @transform_4(%arg0: i32) -> (i32, i32) {
    %c0_i32 = arith.constant 0 : i32
    %c0_i32_0 = arith.constant 0 : i32
    %c0_i32_1 = arith.constant 0 : i32
    return %c0_i32, %c0_i32_0 : i32, i32
  }
  func.func @transform_5(%arg0: i32) -> (i32, i32) {
    %c0_i32 = arith.constant 0 : i32
    %c0_i32_0 = arith.constant 0 : i32
    %c0_i32_1 = arith.constant 0 : i32
    return %c0_i32, %c0_i32_0 : i32, i32
  }
  func.func @transform_6(%arg0: i32) -> (i32, i32) {
    %c0_i32 = arith.constant 0 : i32
    %c0_i32_0 = arith.constant 0 : i32
    %c0_i32_1 = arith.constant 0 : i32
    return %c0_i32, %c0_i32_0 : i32, i32
  }
  func.func @transform_7(%arg0: i32) -> (i32, i32) {
    %c0_i32 = arith.constant 0 : i32
    %c0_i32_0 = arith.constant 0 : i32
    return %arg0, %c0_i32 : i32, i32
  }
}

module attributes {stable_mosaic.version = 11 : i64} {
  func.func @decoder_kernel(%arg0: i32, %arg1: memref<8x16xf32, #tpu.memory_space<vmem>>, %arg2: memref<16x128xf32, #tpu.memory_space<vmem>>, %arg3: memref<1x128xf32, #tpu.memory_space<vmem>>, %arg4: memref<128x128xf32, #tpu.memory_space<vmem>>, %arg5: memref<1x128xf32, #tpu.memory_space<vmem>>, %arg6: memref<128x128xf32, #tpu.memory_space<vmem>>, %arg7: memref<1x128xf32, #tpu.memory_space<vmem>>, %arg8: memref<8x128xf32, #tpu.memory_space<vmem>>) attributes {dimension_semantics = [#tpu.dimension_semantics<parallel>], iteration_bounds = array<i64: 2>, scalar_prefetch = 0 : i64, scratch_operands = 0 : i64, tpu.core_type = #tpu.core_type<tc>, window_params = [{transform_indices = @transform_0, window_bounds = array<i64: 8, 16>}, {pipeline_mode = #tpu.pipeline_mode<synchronous>, transform_indices = @transform_1, window_bounds = array<i64: 16, 128>}, {pipeline_mode = #tpu.pipeline_mode<synchronous>, transform_indices = @transform_2, window_bounds = array<i64: 1, 128>}, {pipeline_mode = #tpu.pipeline_mode<synchronous>, transform_indices = @transform_3, window_bounds = array<i64: 128, 128>}, {pipeline_mode = #tpu.pipeline_mode<synchronous>, transform_indices = @transform_4, window_bounds = array<i64: 1, 128>}, {pipeline_mode = #tpu.pipeline_mode<synchronous>, transform_indices = @transform_5, window_bounds = array<i64: 128, 128>}, {pipeline_mode = #tpu.pipeline_mode<synchronous>, transform_indices = @transform_6, window_bounds = array<i64: 1, 128>}, {transform_indices = @transform_7, window_bounds = array<i64: 8, 128>}]} {
    %c0 = arith.constant 0 : index
    %c0_0 = arith.constant 0 : index
    %0 = vector.load %arg1[%c0, %c0_0] : memref<8x16xf32, #tpu.memory_space<vmem>>, vector<8x16xf32>
    %c0_1 = arith.constant 0 : index
    %c0_2 = arith.constant 0 : index
    %1 = vector.load %arg2[%c0_1, %c0_2] : memref<16x128xf32, #tpu.memory_space<vmem>>, vector<16x128xf32>
    %cst = arith.constant dense<0.000000e+00> : vector<8x128xf32>
    %2 = tpu.matmul %0, %1, %cst {dimension_numbers = #tpu.dot_dimension_numbers<[1], [0], [0], [1], [0, 0, 1, 1], [], []>} : vector<8x16xf32>, vector<16x128xf32>, vector<8x128xf32> -> vector<8x128xf32>
    %c0_3 = arith.constant 0 : index
    %c0_4 = arith.constant 0 : index
    %3 = vector.load %arg3[%c0_3, %c0_4] : memref<1x128xf32, #tpu.memory_space<vmem>>, vector<1x128xf32>
    %4 = vector.broadcast %3 : vector<1x128xf32> to vector<8x128xf32>
    %5 = arith.addf %2, %4 : vector<8x128xf32>
    %cst_5 = arith.constant 0.000000e+00 : f32
    %6 = vector.broadcast %cst_5 : f32 to vector<8x128xf32>
    %7 = arith.maximumf %5, %6 : vector<8x128xf32>
    %c0_6 = arith.constant 0 : index
    %c0_7 = arith.constant 0 : index
    %8 = vector.load %arg4[%c0_6, %c0_7] : memref<128x128xf32, #tpu.memory_space<vmem>>, vector<128x128xf32>
    %cst_8 = arith.constant dense<0.000000e+00> : vector<8x128xf32>
    %9 = tpu.matmul %7, %8, %cst_8 {dimension_numbers = #tpu.dot_dimension_numbers<[1], [0], [0], [1], [0, 0, 1, 1], [], []>} : vector<8x128xf32>, vector<128x128xf32>, vector<8x128xf32> -> vector<8x128xf32>
    %c0_9 = arith.constant 0 : index
    %c0_10 = arith.constant 0 : index
    %10 = vector.load %arg5[%c0_9, %c0_10] : memref<1x128xf32, #tpu.memory_space<vmem>>, vector<1x128xf32>
    %11 = vector.broadcast %10 : vector<1x128xf32> to vector<8x128xf32>
    %12 = arith.addf %9, %11 : vector<8x128xf32>
    %cst_11 = arith.constant 0.000000e+00 : f32
    %13 = vector.broadcast %cst_11 : f32 to vector<8x128xf32>
    %14 = arith.maximumf %12, %13 : vector<8x128xf32>
    %c0_12 = arith.constant 0 : index
    %c0_13 = arith.constant 0 : index
    %15 = vector.load %arg6[%c0_12, %c0_13] : memref<128x128xf32, #tpu.memory_space<vmem>>, vector<128x128xf32>
    %cst_14 = arith.constant dense<0.000000e+00> : vector<8x128xf32>
    %16 = tpu.matmul %14, %15, %cst_14 {dimension_numbers = #tpu.dot_dimension_numbers<[1], [0], [0], [1], [0, 0, 1, 1], [], []>} : vector<8x128xf32>, vector<128x128xf32>, vector<8x128xf32> -> vector<8x128xf32>
    %c0_15 = arith.constant 0 : index
    %c0_16 = arith.constant 0 : index
    %17 = vector.load %arg7[%c0_15, %c0_16] : memref<1x128xf32, #tpu.memory_space<vmem>>, vector<1x128xf32>
    %18 = vector.broadcast %17 : vector<1x128xf32> to vector<8x128xf32>
    %19 = arith.addf %16, %18 : vector<8x128xf32>
    %20 = math.tanh %19 : vector<8x128xf32>
    %c0_17 = arith.constant 0 : index
    %c0_18 = arith.constant 0 : index
    %21 = vector.load %arg8[%c0_17, %c0_18] : memref<8x128xf32, #tpu.memory_space<vmem>>, vector<8x128xf32>
    tpu.vector_store %arg8[%c0_17, %c0_18], %20 {strides = array<i32>} : memref<8x128xf32, #tpu.memory_space<vmem>>, vector<8x128xf32>,
    return
  }
  func.func @transform_0(%arg0: i32) -> (i32, i32) {
    %c0_i32 = arith.constant 0 : i32
    %c0_i32_0 = arith.constant 0 : i32
    return %arg0, %c0_i32 : i32, i32
  }
  func.func @transform_1(%arg0: i32) -> (i32, i32) {
    %c0_i32 = arith.constant 0 : i32
    %c0_i32_0 = arith.constant 0 : i32
    %c0_i32_1 = arith.constant 0 : i32
    return %c0_i32, %c0_i32_0 : i32, i32
  }
  func.func @transform_2(%arg0: i32) -> (i32, i32) {
    %c0_i32 = arith.constant 0 : i32
    %c0_i32_0 = arith.constant 0 : i32
    %c0_i32_1 = arith.constant 0 : i32
    return %c0_i32, %c0_i32_0 : i32, i32
  }
  func.func @transform_3(%arg0: i32) -> (i32, i32) {
    %c0_i32 = arith.constant 0 : i32
    %c0_i32_0 = arith.constant 0 : i32
    %c0_i32_1 = arith.constant 0 : i32
    return %c0_i32, %c0_i32_0 : i32, i32
  }
  func.func @transform_4(%arg0: i32) -> (i32, i32) {
    %c0_i32 = arith.constant 0 : i32
    %c0_i32_0 = arith.constant 0 : i32
    %c0_i32_1 = arith.constant 0 : i32
    return %c0_i32, %c0_i32_0 : i32, i32
  }
  func.func @transform_5(%arg0: i32) -> (i32, i32) {
    %c0_i32 = arith.constant 0 : i32
    %c0_i32_0 = arith.constant 0 : i32
    %c0_i32_1 = arith.constant 0 : i32
    return %c0_i32, %c0_i32_0 : i32, i32
  }
  func.func @transform_6(%arg0: i32) -> (i32, i32) {
    %c0_i32 = arith.constant 0 : i32
    %c0_i32_0 = arith.constant 0 : i32
    %c0_i32_1 = arith.constant 0 : i32
    return %c0_i32, %c0_i32_0 : i32, i32
  }
  func.func @transform_7(%arg0: i32) -> (i32, i32) {
    %c0_i32 = arith.constant 0 : i32
    %c0_i32_0 = arith.constant 0 : i32
    return %arg0, %c0_i32 : i32, i32
  }
}

</mosaic_0001>

<bundles_post_ra>
// kernel: tpu_custom_call.1
= control target key start
LH: loop header
LB: loop body
LE: loop exit
PB: predicated region body
PF: predicated region fallthrough
CT: control target
= control target key end

     0   :  { %s1409_s0 = inlined_call_operand.hbm [shape: f32[16,16], index: 0, kind: input, shape index: {}]   ;;  %s1410_s1 = inlined_call_operand.hbm [shape: f32[16,128], index: 1, kind: input, shape index: {}]   ;;  %s1411_s2 = inlined_call_operand.vmem [shape: f32[1,128], index: 2, kind: input, shape index: {}]   ;;  %s1412_s3 = inlined_call_operand.hbm [shape: f32[128,128], index: 3, kind: input, shape index: {}]   ;;  %s1413_s4 = inlined_call_operand.vmem [shape: f32[1,128], index: 4, kind: input, shape index: {}]   ;;  %s1414_s5 = inlined_call_operand.hbm [shape: f32[128,128], index: 5, kind: input, shape index: {}]   ;;  %s1415_s6 = inlined_call_operand.vmem [shape: f32[1,128], index: 6, kind: input, shape index: {}]   ;;  %s1416_s7 = inlined_call_operand.hbm [shape: f32[16,128], index: 7, kind: output, shape index: {}]  }
   0x1   :  { %1421 = sst [smem:[#allocation15_spill]] %s1410_s1 }
   0x2   :  { %1422 = sst [smem:[#allocation16_spill]] %s1412_s3 }
   0x3   :  { %12 = vsyncpa [#allocation3], 0 }
   0x4   :  { %14 = vsyncpa [#allocation3 + $0x1], 0 }
   0x5   :  { %15 = vsyncpa [#allocation6], 0 }
   0x6   :  { %16 = vsyncpa [#allocation9], 0 }
   0x7   :  { %17 = vsyncpa [#allocation4], 0 }
   0x8   :  { %19 = vsyncpa [#allocation4 + $0x1], 0  ;;  %s1173_s24 = smov 0   ;;  %s1175_s25 = smov 0  }
   0x9   :  { %s1177_s26 = smov 0   ;;  %s1179_s27 = smov 0  }
   0xa LB: > { %s1194_s28 = sadd.s32 4294967295, %s1122_s27   ;;  %s725_s29 = sadd.s32 4294967294, %s1122_s27   ;;  %s1122_s27 = sphi %s1179_s27, %s1444_s27   ;;  %s1118_s26 = sphi %s1177_s26, %s1443_s26   ;;  %s1114_s25 = sphi %s1175_s25, %s1442_s25   ;;  %s1110_s24 = sphi %s1173_s24, %s1441_s24  }
   0xb   : > { %p45_p0 = scmp.ne.s32.totalorder %s1114_s25, %s1110_s24  ;;  %p1417_p1 = scmp.eq.s32.totalorder %s1194_s28, 0 }
   0xc   : > { %p201_p3 = scmp.eq.s32.totalorder %s725_s29, 1  ;;  %p726_p5 = scmp.ge.s32.totalorder %s1122_s27, 1 }
   0xd   : > { %p1203_p4 = por %p1417_p1, %p45_p0  ;;  %p208_p7 = scmp.lt.s32.totalorder %s1122_s27, 3 }
   0xe   : > { %p1208_p6 = por %p201_p3, %p45_p0  ;;  %s1124_s10 = smov [#allocation5]  }
   0xf   : > { %s1423_s30 = scalar_select %p1203_p4, 1, 0 }
  0x10   : > { %s1424_s8 = scalar_select %p1208_p6, 1, 0 }
  0x11   : > { %p1213_p8 = pnand %p726_p5, %p208_p7  ;;  %s220_s11 = sshll.u32 %s1124_s10, 4  ;;  %s221_s11 = int_to_ptr.vmem [resolvable:$true] %s220_s11 }
  0x12   : > { %s1125_s13 = smov [#allocation7]   ;;  %s1126_s15 = smov [#allocation8]  }
  0x13   : > { %s1425_s9 = scalar_select %p1213_p8, 1, 0 }
  0x14   : > { %p877_p9 = pneg %p1213_p8  ;;  %s236_s14 = sshll.u32 %s1125_s13, 4  ;;  %s237_s14 = int_to_ptr.vmem [resolvable:$true] %s236_s14 }
  0x15   : > { %s252_s16 = sshll.u32 %s1126_s15, 4  ;;  %s955_s17 = scalar_lea.vmem %s221_s11, 256  ;;  %s253_s16 = int_to_ptr.vmem [resolvable:$true] %s252_s16 }
  0x16   : > { %p1222_p11 = pnand %p877_p9, %p1417_p1  ;;  %p956_p13 = scmp.ne.s32.totalorder %s221_s11, %s955_s17 }
  0x17   : > { %p963_p5 = scmp.lt.s32.totalorder %s221_s11, %s221_s11  ;;  %p964_p7 = scmp.lt.s32.totalorder %s955_s17, %s955_s17 }
  0x18   : > { %p946_p12 = pneg %p1222_p11 }
  0x19   : > { %p965_p9 = por %p964_p7, %p963_p5 }
  0x1a   : > { %p958_p0 = pnand %p956_p13, %p946_p12 }
  0x1c   : > { %p959_p3 = pneg %p958_p0 }
  0x1e   : > { %p966_p10 = pnand %p965_p9, %p959_p3 }
  0x20   : > { %969 = shalt.err (!%p966_p10)
}
  0x21   : > { %s1127_s18 = smov 128   ;;  %s1128_s19 = smov 8  }
  0x22   : > { %s1427_s1 = sld [smem:[#allocation15_spill]]  ;;  %s981_s22 = scalar_lea.vmem %s237_s14, 2048 }
  0x23   : > { %p982_p1 = scmp.ne.s32.totalorder %s237_s14, %s981_s22  ;;  %p989_p2 = scmp.lt.s32.totalorder %s237_s14, %s237_s14 }
  0x24   : > { %p990_p6 = scmp.lt.s32.totalorder %s981_s22, %s981_s22 }
  0x25   : > { %p984_p13 = pnand %p982_p1, %p946_p12 }
  0x26   : > { %p991_p5 = por %p990_p6, %p989_p2 }
  0x27   : > { %p985_p0 = pneg %p984_p13 }
  0x28   : > { %880 = dma.hbm_to_vmem [thread:$0]  (!%p1222_p11), %s1427_s1, 256, %s221_s11, [#allocation6], %s1127_s18, %s1127_s18, %s1128_s19  }
  0x29   : > { %p992_p3 = pnand %p991_p5, %p985_p0 }
  0x2b   : > { %995 = shalt.err (!%p992_p3)
}
  0x2c   : > { %s1428_s3 = sld [smem:[#allocation16_spill]]  ;;  %s1007_s10 = scalar_lea.vmem %s253_s16, 2048 }
  0x2d   : > { %p1008_p10 = scmp.ne.s32.totalorder %s253_s16, %s1007_s10  ;;  %p1015_p9 = scmp.lt.s32.totalorder %s253_s16, %s253_s16 }
  0x2e   : > { %p1016_p13 = scmp.lt.s32.totalorder %s1007_s10, %s1007_s10 }
  0x2f   : > { %p1010_p7 = pnand %p1008_p10, %p946_p12 }
  0x30   : > { %p1017_p4 = por %p1016_p13, %p1015_p9 }
  0x31   : > { %p1011_p1 = pneg %p1010_p7 }
  0x32   : > { %883 = dma.hbm_to_vmem [thread:$0]  (!%p1222_p11), %s1428_s3, 2048, %s237_s14, [#allocation6], %s1127_s18, %s1127_s18, %s1128_s19  }
  0x33   : > { %p1018_p2 = pnand %p1017_p4, %p1011_p1 }
  0x35   : > { %1021 = shalt.err (!%p1018_p2)
}
  0x36   : > { %886 = dma.hbm_to_vmem [thread:$0]  (!%p1222_p11), %s1414_s5, 2048, %s253_s16, [#allocation9], %s1127_s18, %s1127_s18, %s1128_s19  }
  0x37   : > { %s1253_s14 = sadd.s32 1, %s1122_s27   ;;  %s32_s12 = sadd.s32 1, %s1118_s26 }
  0x38   : > { %s29_s15 = ssub.s32 %s1122_s27, %s1253_s14  ;;  %p39_p6 = scmp.ne.s32.totalorder %s1118_s26, %s1114_s25 }
  0x39   : > { %p30_p4 = scmp.eq.s32.totalorder %s29_s15, 0  ;;  %p40_p12 = scmp.eq.s32.totalorder %s1122_s27, 0 }
  0x3a   : > { %p898_p0 = scmp.lt.s32.totalorder %s1122_s27, 2  ;;  %p1429_p3 = scmp.eq.s32.totalorder %s1194_s28, 1 }
  0x3b   : > { %s1263_s17 = scalar_select %p30_p4, %s1118_s26, %s32_s12  }
  0x3c   : > { %p41_p5 = por %p40_p12, %p39_p6  ;;  %p1267_p10 = por %p1429_p3, %p39_p6 }
  0x3d   : > { %s269_s21 = sand.u32 1, %s1118_s26   ;;  %s732_s22 = sshll.u32 %s1122_s27, 7 }
  0x3e   : > { %s1430_s20 = scalar_select %p1267_p10, 1, 0 }
  0x3f   : > { %s731_s16 = sshll.u32 %s269_s21, 3  ;;  %s1276_s23 = scalar_lea.hbm %s1409_s0, %s732_s22 }
  0x40   : > { %s273_s29 = scalar_lea.vmem [#allocation2], %s731_s16  ;;  %p1278_p11 = pnand %p898_p0, %p41_p5 }
  0x41   : > { %s280_s10 = sshll.u32 %s273_s29, 4  ;;  %s270_s13 = scalar_lea.sflag [#allocation3], %s269_s21  ;;  %s281_s10 = int_to_ptr.vmem [resolvable:$true] %s280_s10 }
  0x42   : > { %s1022_s15 = scalar_lea.hbm %s1276_s23, 128  ;;  %p1024_p1 = pneg %p1278_p11 }
  0x43   : > { %p1023_p7 = scmp.ne.s32.totalorder %s1276_s23, %s1022_s15  ;;  %s1027_s18 = scalar_lea.hbm %s1409_s0, 256 }
  0x44   : > { %p1028_p2 = scmp.lt.s32.totalorder %s1276_s23, %s1409_s0  ;;  %p1029_p4 = scmp.lt.s32.totalorder %s1027_s18, %s1022_s15 }
  0x45   : > { %p1025_p9 = pnand %p1024_p1, %p1023_p7 }
  0x46   : > { %p1030_p6 = por %p1029_p4, %p1028_p2 }
  0x47   : > { %p1026_p13 = pneg %p1025_p9 }
  0x49   : > { %p1031_p12 = pnand %p1030_p6, %p1026_p13 }
  0x4b   : > { %1034 = shalt.err (!%p1031_p12)
}
  0x4c   : > { %s1035_s29 = scalar_lea.vmem %s281_s10, 128  ;;  %s1129_s21 = smov [#allocation2]  }
  0x4d   : > { %p1036_p0 = scmp.ne.s32.totalorder %s281_s10, %s1035_s29  ;;  %s1040_s1 = sshll.u32 %s1129_s21, 4  ;;  %s1041_s1 = int_to_ptr.vmem [resolvable:$false] %s1040_s1 }
  0x4e   : > { %s1042_s3 = scalar_lea.vmem %s1041_s1, 256  ;;  %p1043_p7 = scmp.lt.s32.totalorder %s281_s10, %s1041_s1 }
  0x4f   : > { %p1038_p5 = pnand %p1036_p0, %p1024_p1  ;;  %p1044_p9 = scmp.lt.s32.totalorder %s1042_s3, %s1035_s29 }
  0x51   : > { %p1039_p3 = pneg %p1038_p5  ;;  %p1045_p10 = por %p1044_p9, %p1043_p7 }
  0x53   : > { %p1046_p8 = pnand %p1045_p10, %p1039_p3 }
  0x55   : > { %1049 = shalt.err (!%p1046_p8)
}
  0x56   : > { %890 = dma.hbm_to_vmem [thread:$0]  (!%p1278_p11), %s1276_s23, 128, %s281_s10, %s270_s13  }
  0x57   : > { %p1432_p13 = scmp.ne.s32.totalorder %s1425_s9, 0 }
  0x58   : > { %s1299_s15 = sand.u32 (!%p1432_p13), 1, %s1114_s25   ;;  %p1433_p10 = scmp.ne.s32.totalorder (!%p1432_p13), %s1423_s30, 0 }
  0x59   : > { %289 = sbr.rel (%p1432_p13) target bundleno = 723 (0x2d3), region = 48  ;;  %s734_s12 = sshll.u32 (!%p1432_p13), %s1299_s15, 3 }
  0x5a   : > { %s292_s1 = scalar_lea.sflag (!%p1432_p13), [#allocation3], %s1299_s15  ;;  %s295_s3 = scalar_lea.vmem (!%p1432_p13), [#allocation2], %s734_s12 }
  0x5e   : > { %1093 = dma.done.wait (%p1433_p10), %s292_s1, 128  }
  0x5f   : > { %1095 = vsyncadd (%p1433_p10), %s292_s1, 4294967168  ;;  %p1434_p8 = scmp.eq.s32.totalorder %s1194_s28, 0 }
  0x61   : > { %1097 = dma.done.wait (%p1434_p8), [#allocation6], 2304   ;;  %p1435_p11 = pmov %p1434_p8 }
  0x62   : > { %p1436_p1 = pmov %p1434_p8 }
  0x63   : > { %1099 = vsyncadd (%p1435_p11), [#allocation6], 4294964992 }
  0x64   : > { %1101 = dma.done.wait (%p1436_p1), [#allocation9], 2048   ;;  %p1437_p2 = pmov %p1436_p1 }
  0x65   : > { %v1130_v0 = vmov 0.0   ;;  %vm1131_vm0 = vmmov 0   ;;  %v340_v1 = vld [vmem:[#allocation5 + $0x8] sm:$0xff]  ;;  %v339_v2 = vld [vmem:[#allocation5] sm:$0xff]  ;;  %v338_v3 = vld [vmem:[%s295_s3] sm:$0xff]  ;;  %vm348_vm1 = vcmask 130048  }
  0x66   : > { %1103 = vsyncadd (%p1437_p2), [#allocation9], 4294965248  ;;  %784 = vmatprep.subr.mxu0 %v1130_v0  ;;  %788 = vmatprep.mubr.msk.f32.mxu0 %vm1131_vm0, %v1130_v0  ;;  %v438_v4 = vld [vmem:[#allocation7 + $0x78] sm:$0xff]  ;;  %v437_v5 = vld [vmem:[#allocation7 + $0x70] sm:$0xff]  ;;  %s744_s22 = sshll.u32 %s1194_s28, 7  ;;  %s337_s18 = scalar_lea.vmem [#allocation10], %s734_s12 }
  0x67   : > { %791 = vmatprep.subr.mxu1 %v1130_v0  ;;  %823 = vmatprep.mubr.msk.f32.mxu1 %vm1131_vm0, %v1130_v0  ;;  %v436_v6 = vld [vmem:[#allocation7 + $0x68] sm:$0xff]  ;;  %v435_v7 = vld [vmem:[#allocation7 + $0x60] sm:$0xff]  ;;  %v434_v8 = vld [vmem:[#allocation7 + $0x58] sm:$0xff]  ;;  %s626_s19 = sshll.u32 %s337_s18, 4  ;;  %s1372_s21 = scalar_lea.hbm %s1416_s7, %s744_s22  ;;  %s627_s19 = int_to_ptr.vmem [resolvable:$true] %s626_s19 }
  0x68   : > { %785 = vmatpush3.msra.mxu0 %v340_v1  ;;  %792 = vmatpush3.msra.mxu1 %v438_v4  ;;  %v433_v9 = vld [vmem:[#allocation7 + $0x50] sm:$0xff]  ;;  %v432_v10 = vld [vmem:[#allocation7 + $0x48] sm:$0xff]  ;;  %v431_v11 = vld [vmem:[#allocation7 + $0x40] sm:$0xff]  ;;  %s613_s1 = scalar_lea.sflag [#allocation4], %s1299_s15  ;;  %s1050_s3 = scalar_lea.vmem %s627_s19, 128 }
  0x69   : > { %786 = vmatprep.subr.mxu0 %v1130_v0  ;;  %793 = vmatprep.subr.mxu1 %v1130_v0  ;;  %v430_v12 = vld [vmem:[#allocation7 + $0x38] sm:$0xff]  ;;  %v429_v13 = vld [vmem:[#allocation7 + $0x30] sm:$0xff]  ;;  %v428_v14 = vld [vmem:[#allocation7 + $0x28] sm:$0xff]  ;;  %p1051_p4 = scmp.ne.s32.totalorder %s627_s19, %s1050_s3  ;;  %p1438_p6 = scmp.ne.s32.totalorder %s1430_s20, 0 }
  0x6a   : > { %787 = vmatpush3.msra.mxu0 %v339_v2  ;;  %794 = vmatpush3.msra.mxu1 %v437_v5  ;;  %v427_v15 = vld [vmem:[#allocation7 + $0x20] sm:$0xff]  ;;  %v426_v16 = vld [vmem:[#allocation7 + $0x18] sm:$0xff]  ;;  %v425_v17 = vld [vmem:[#allocation7 + $0x10] sm:$0xff]  ;;  %s1132_s30 = smov [#allocation10]  }
  0x6b   : > { %789 = vmatmul.mubr.msk.f32.vlgmr.msra.gmra.mxu0 %vm348_vm1, %v338_v3  ;;  %795 = vmatprep.subr.mxu1 %v1130_v0  ;;  %v424_v18 = vld [vmem:[#allocation7 + $0x8] sm:$0xff]  ;;  %v423_v19 = vld [vmem:[#allocation7] sm:$0xff]  ;;  %v532_v20 = vld [vmem:[#allocation8 + $0x78] sm:$0xff]  ;;  %p1052_p12 = pnand %p1051_p4, %p1438_p6  ;;  %s1054_s9 = sshll.u32 %s1132_s30, 4  ;;  %s1055_s9 = int_to_ptr.vmem [resolvable:$false] %s1054_s9 }
  0x6c   : > { %826 = vmatprep.subr.mxu0 %v1130_v0  ;;  %796 = vmatpush3.msra.mxu1 %v436_v6  ;;  %v531_v21 = vld [vmem:[#allocation8 + $0x70] sm:$0xff]  ;;  %v530_v22 = vld [vmem:[#allocation8 + $0x68] sm:$0xff]  ;;  %v529_v23 = vld [vmem:[#allocation8 + $0x60] sm:$0xff]  ;;  %s1056_s28 = scalar_lea.vmem %s1055_s9, 256  ;;  %p1057_p5 = scmp.lt.s32.totalorder %s627_s19, %s1055_s9 }
  0x6d   : > { %858 = vmatprep.mubr.msk.f32.mxu0 %vm1131_vm0, %v1130_v0  ;;  %797 = vmatprep.subr.mxu1 %v1130_v0  ;;  %v528_v24 = vld [vmem:[#allocation8 + $0x58] sm:$0xff]  ;;  %v527_v25 = vld [vmem:[#allocation8 + $0x50] sm:$0xff]  ;;  %v526_v26 = vld [vmem:[#allocation8 + $0x48] sm:$0xff]  ;;  %p1053_p0 = pneg %p1052_p12  ;;  %p1058_p3 = scmp.lt.s32.totalorder %s1056_s28, %s1050_s3 }
  0x6e   : > { %798 = vmatpush3.msra.mxu1 %v435_v7  ;;  %827 = vmatpush3.msra.mxu0 %v532_v20  ;;  %v525_v27 = vld [vmem:[#allocation8 + $0x40] sm:$0xff]  ;;  %v524_v28 = vld [vmem:[#allocation8 + $0x38] sm:$0xff]  ;;  %v523_v29 = vld [vmem:[#allocation8 + $0x30] sm:$0xff] }
  0x6f   : > { %799 = vmatprep.subr.mxu1 %v1130_v0  ;;  %828 = vmatprep.subr.mxu0 %v1130_v0  ;;  %v522_v30 = vld [vmem:[#allocation8 + $0x28] sm:$0xff]  ;;  %v521_v31 = vld [vmem:[#allocation8 + $0x20] sm:$0xff]  ;;  %v520_v32 = vld [vmem:[#allocation8 + $0x18] sm:$0xff]  ;;  %p1059_p7 = por %p1058_p3, %p1057_p5 }
  0x70   : > { %800 = vmatpush3.msra.mxu1 %v434_v8  ;;  %829 = vmatpush3.msra.mxu0 %v531_v21  ;;  %v739_v33 = vld [vmem:[%s1411_s2] ss:$0 sm:$0xff]  ;;  %v519_v38 = vld [vmem:[#allocation8 + $0x10] sm:$0xff]  ;;  %v518_v39 = vld [vmem:[#allocation8 + $0x8] sm:$0xff] }
  0x71   : > { %801 = vmatprep.subr.mxu1 %v1130_v0  ;;  %830 = vmatprep.subr.mxu0 %v1130_v0  ;;  %v517_v40 = vld [vmem:[#allocation8] sm:$0xff]  ;;  %p1060_p9 = pnand %p1059_p7, %p1053_p0 }
  0x72   : > { %802 = vmatpush3.msra.mxu1 %v433_v9  ;;  %831 = vmatpush3.msra.mxu0 %v530_v22  ;;  %v741_v41 = vld [vmem:[%s1413_s4] ss:$0 sm:$0xff] }
  0x73   : > { %803 = vmatprep.subr.mxu1 %v1130_v0  ;;  %832 = vmatprep.subr.mxu0 %v1130_v0  ;;  %v742_v46 = vld [vmem:[%s1415_s6] ss:$0 sm:$0xff] }
  0x74   : > { %804 = vmatpush3.msra.mxu1 %v432_v10  ;;  %833 = vmatpush3.msra.mxu0 %v529_v23 }
  0x75   : > { %805 = vmatprep.subr.mxu1 %v1130_v0  ;;  %834 = vmatprep.subr.mxu0 %v1130_v0 }
  0x76   : > { %806 = vmatpush3.msra.mxu1 %v431_v11  ;;  %835 = vmatpush3.msra.mxu0 %v528_v24 }
  0x77   : > { %807 = vmatprep.subr.mxu1 %v1130_v0  ;;  %836 = vmatprep.subr.mxu0 %v1130_v0 }
  0x78   : > { %808 = vmatpush3.msra.mxu1 %v430_v12  ;;  %837 = vmatpush3.msra.mxu0 %v527_v25 }
  0x79   : > { %809 = vmatprep.subr.mxu1 %v1130_v0  ;;  %838 = vmatprep.subr.mxu0 %v1130_v0 }
  0x7a   : > { %810 = vmatpush3.msra.mxu1 %v429_v13  ;;  %839 = vmatpush3.msra.mxu0 %v526_v26 }
  0x7b   : > { %811 = vmatprep.subr.mxu1 %v1130_v0  ;;  %840 = vmatprep.subr.mxu0 %v1130_v0 }
  0x7c   : > { %812 = vmatpush3.msra.mxu1 %v428_v14  ;;  %841 = vmatpush3.msra.mxu0 %v525_v27 }
  0x7d   : > { %813 = vmatprep.subr.mxu1 %v1130_v0  ;;  %842 = vmatprep.subr.mxu0 %v1130_v0 }
  0x7e   : > { %814 = vmatpush3.msra.mxu1 %v427_v15  ;;  %843 = vmatpush3.msra.mxu0 %v524_v28 }
  0x7f   : > { %815 = vmatprep.subr.mxu1 %v1130_v0  ;;  %844 = vmatprep.subr.mxu0 %v1130_v0 }
  0x80   : > { %816 = vmatpush3.msra.mxu1 %v426_v16  ;;  %845 = vmatpush3.msra.mxu0 %v523_v29 }
  0x81   : > { %817 = vmatprep.subr.mxu1 %v1130_v0  ;;  %846 = vmatprep.subr.mxu0 %v1130_v0 }
  0x82   : > { %818 = vmatpush3.msra.mxu1 %v425_v17  ;;  %847 = vmatpush3.msra.mxu0 %v522_v30 }
  0x83   : > { %819 = vmatprep.subr.mxu1 %v1130_v0  ;;  %848 = vmatprep.subr.mxu0 %v1130_v0 }
  0x84   : > { %820 = vmatpush3.msra.mxu1 %v424_v18  ;;  %849 = vmatpush3.msra.mxu0 %v521_v31 }
  0x85   : > { %821 = vmatprep.subr.mxu1 %v1130_v0  ;;  %850 = vmatprep.subr.mxu0 %v1130_v0 }
  0x86   : > { %822 = vmatpush3.msra.mxu1 %v423_v19  ;;  %851 = vmatpush3.msra.mxu0 %v520_v32 }
  0x87   : > { %852 = vmatprep.subr.mxu0 %v1130_v0 }
  0x88   : > { %853 = vmatpush3.msra.mxu0 %v519_v38 }
  0x89   : > { %854 = vmatprep.subr.mxu0 %v1130_v0 }
  0x8a   : > { %855 = vmatpush3.msra.mxu0 %v518_v39 }
  0x8b   : > { %856 = vmatprep.subr.mxu0 %v1130_v0 }
  0x8c   : > { %857 = vmatpush3.msra.mxu0 %v517_v40 }
 0x12b   : > { %v418_v34 = vpop.f32.mrf.mxu0 }
 0x12c   : > { %v419_v35 = vadd.f32 %v739_v33, %v418_v34 }
 0x12d   : > { %v790_v36 = vpop.f32.mrf.mxu0 }
 0x12e   : > { %v422_v37 = vmax.f32 %v419_v35, 0.0 }
 0x130   : > { %824 = vmatmul.mubr.f32.vlgmr.msra.gmra.mxu1 %v422_v37 }
 0x1f0   : > { %v512_v42 = vpop.f32.mrf.mxu1 }
 0x1f1   : > { %v513_v43 = vadd.f32 %v741_v41, %v512_v42 }
 0x1f2   : > { %v825_v44 = vpop.f32.mrf.mxu1 }
 0x1f3   : > { %v516_v45 = vmax.f32 %v513_v43, 0.0 }
 0x1f5   : > { %859 = vmatmul.mubr.f32.vlgmr.msra.gmra.mxu0 %v516_v45 }
 0x2b5   : > { %v606_v47 = vpop.f32.mrf.mxu0 }
 0x2b6   : > { %v607_v48 = vadd.f32 %v742_v46, %v606_v47 }
 0x2b7   : > { %v860_v49 = vpop.f32.mrf.mxu0 }
 0x2b8   : > { %942 = vtanh.f32 %v607_v48 }
 0x2c5   : > { %v943_v50 = vpop.eup %942 }
 0x2c6   : > { %611 = vst [vmem:[%s337_s18] sm:$0xff] %v943_v50 }
 0x2c7   : > { %1063 = shalt.err (!%p1060_p9)
}
 0x2c8   : > { %s1064_s12 = scalar_lea.hbm %s1372_s21, 128  ;;  %s1068_s10 = scalar_lea.hbm %s1416_s7, 256 }
 0x2c9   : > { %p1065_p13 = scmp.ne.s32.totalorder %s1372_s21, %s1064_s12  ;;  %p1069_p11 = scmp.lt.s32.totalorder %s1372_s21, %s1416_s7 }
 0x2ca   : > { %p1070_p1 = scmp.lt.s32.totalorder %s1068_s10, %s1064_s12 }
 0x2cb   : > { %p1066_p10 = pnand %p1065_p13, %p1438_p6 }
 0x2cc   : > { %p1071_p2 = por %p1070_p1, %p1069_p11 }
 0x2cd   : > { %p1067_p8 = pneg %p1066_p10 }
 0x2cf   : > { %p1072_p4 = pnand %p1071_p2, %p1067_p8 }
 0x2d1   : > { %1075 = shalt.err (!%p1072_p4)
}
 0x2d2   : > { %875 = dma.vmem_to_hbm [thread:$0]  (%p1438_p6), %s627_s19, 128, %s1372_s21, %s613_s1  }
 0x2d3 PF: > { %s638_s22 = sand.u32 1, %s1110_s24   ;;  %p1439_p12 = scmp.ne.s32.totalorder %s1424_s8, 0 }
 0x2d4   : > { %p1440_p0 = scmp.ge.s32.totalorder %s1122_s27, 2  ;;  %s639_s18 = scalar_lea.sflag [#allocation4], %s638_s22 }
 0x2d6   : > { %p892_p5 = pnand %p1440_p0, %p1439_p12 }
 0x2d8   : > { %p893_p3 = pneg %p892_p5 }
 0x2da   : > { %1105 = dma.done.wait (%p893_p3), %s639_s18, 128  }
 0x2db   : > { %1107 = vsyncadd (%p893_p3), %s639_s18, 4294967168  ;;  %p22_p7 = scmp.ge.s32.totalorder %s1253_s14, 4   ;;  %s1441_s24 = smov %s1114_s25 }
 0x2dc   : > { %s1442_s25 = smov %s1118_s26  ;;  %s1443_s26 = smov %s1263_s17 }
 0x2dd   : > { %s1444_s27 = smov %s1253_s14  ;;  %24 = sbr.rel (!%p22_p7) target bundleno = 10 (0xa), region = 105 }
 0x2e2   :  { %644 = vsyncpa [#allocation3], 1 }
 0x2e3   :  { %646 = vsyncpa [#allocation3 + $0x1], 1 }
 0x2e4   :  { %647 = vsyncpa [#allocation6], 1 }
 0x2e5   :  { %648 = vsyncpa [#allocation9], 1 }
 0x2e6   :  { %649 = vsyncpa [#allocation4], 1 }
 0x2e7   :  { %651 = vsyncpa [#allocation4 + $0x1], 1 }

// kernel: tpu_custom_call.1
= control target key start
LH: loop header
LB: loop body
LE: loop exit
PB: predicated region body
PF: predicated region fallthrough
CT: control target
= control target key end

     0   :  { %s1409_s0 = inlined_call_operand.hbm [shape: f32[16,16], index: 0, kind: input, shape index: {}]   ;;  %s1410_s1 = inlined_call_operand.hbm [shape: f32[16,128], index: 1, kind: input, shape index: {}]   ;;  %s1411_s2 = inlined_call_operand.vmem [shape: f32[1,128], index: 2, kind: input, shape index: {}]   ;;  %s1412_s3 = inlined_call_operand.hbm [shape: f32[128,128], index: 3, kind: input, shape index: {}]   ;;  %s1413_s4 = inlined_call_operand.vmem [shape: f32[1,128], index: 4, kind: input, shape index: {}]   ;;  %s1414_s5 = inlined_call_operand.hbm [shape: f32[128,128], index: 5, kind: input, shape index: {}]   ;;  %s1415_s6 = inlined_call_operand.vmem [shape: f32[1,128], index: 6, kind: input, shape index: {}]   ;;  %s1416_s7 = inlined_call_operand.hbm [shape: f32[16,128], index: 7, kind: output, shape index: {}]  }
   0x1   :  { %1421 = sst [smem:[#allocation15_spill]] %s1410_s1 }
   0x2   :  { %1422 = sst [smem:[#allocation16_spill]] %s1412_s3 }
   0x3   :  { %12 = vsyncpa [#allocation3], 0 }
   0x4   :  { %14 = vsyncpa [#allocation3 + $0x1], 0 }
   0x5   :  { %15 = vsyncpa [#allocation6], 0 }
   0x6   :  { %16 = vsyncpa [#allocation9], 0 }
   0x7   :  { %17 = vsyncpa [#allocation4], 0 }
   0x8   :  { %19 = vsyncpa [#allocation4 + $0x1], 0  ;;  %s1173_s24 = smov 0   ;;  %s1175_s25 = smov 0  }
   0x9   :  { %s1177_s26 = smov 0   ;;  %s1179_s27 = smov 0  }
   0xa LB: > { %s1194_s28 = sadd.s32 4294967295, %s1122_s27   ;;  %s725_s29 = sadd.s32 4294967294, %s1122_s27   ;;  %s1122_s27 = sphi %s1179_s27, %s1444_s27   ;;  %s1118_s26 = sphi %s1177_s26, %s1443_s26   ;;  %s1114_s25 = sphi %s1175_s25, %s1442_s25   ;;  %s1110_s24 = sphi %s1173_s24, %s1441_s24  }
   0xb   : > { %p45_p0 = scmp.ne.s32.totalorder %s1114_s25, %s1110_s24  ;;  %p1417_p1 = scmp.eq.s32.totalorder %s1194_s28, 0 }
   0xc   : > { %p201_p3 = scmp.eq.s32.totalorder %s725_s29, 1  ;;  %p726_p5 = scmp.ge.s32.totalorder %s1122_s27, 1 }
   0xd   : > { %p1203_p4 = por %p1417_p1, %p45_p0  ;;  %p208_p7 = scmp.lt.s32.totalorder %s1122_s27, 3 }
   0xe   : > { %p1208_p6 = por %p201_p3, %p45_p0  ;;  %s1124_s10 = smov [#allocation5]  }
   0xf   : > { %s1423_s30 = scalar_select %p1203_p4, 1, 0 }
  0x10   : > { %s1424_s8 = scalar_select %p1208_p6, 1, 0 }
  0x11   : > { %p1213_p8 = pnand %p726_p5, %p208_p7  ;;  %s220_s11 = sshll.u32 %s1124_s10, 4  ;;  %s221_s11 = int_to_ptr.vmem [resolvable:$true] %s220_s11 }
  0x12   : > { %s1125_s13 = smov [#allocation7]   ;;  %s1126_s15 = smov [#allocation8]  }
  0x13   : > { %s1425_s9 = scalar_select %p1213_p8, 1, 0 }
  0x14   : > { %p877_p9 = pneg %p1213_p8  ;;  %s236_s14 = sshll.u32 %s1125_s13, 4  ;;  %s237_s14 = int_to_ptr.vmem [resolvable:$true] %s236_s14 }
  0x15   : > { %s252_s16 = sshll.u32 %s1126_s15, 4  ;;  %s955_s17 = scalar_lea.vmem %s221_s11, 256  ;;  %s253_s16 = int_to_ptr.vmem [resolvable:$true] %s252_s16 }
  0x16   : > { %p1222_p11 = pnand %p877_p9, %p1417_p1  ;;  %p956_p13 = scmp.ne.s32.totalorder %s221_s11, %s955_s17 }
  0x17   : > { %p963_p5 = scmp.lt.s32.totalorder %s221_s11, %s221_s11  ;;  %p964_p7 = scmp.lt.s32.totalorder %s955_s17, %s955_s17 }
  0x18   : > { %p946_p12 = pneg %p1222_p11 }
  0x19   : > { %p965_p9 = por %p964_p7, %p963_p5 }
  0x1a   : > { %p958_p0 = pnand %p956_p13, %p946_p12 }
  0x1c   : > { %p959_p3 = pneg %p958_p0 }
  0x1e   : > { %p966_p10 = pnand %p965_p9, %p959_p3 }
  0x20   : > { %969 = shalt.err (!%p966_p10)
}
  0x21   : > { %s1127_s18 = smov 128   ;;  %s1128_s19 = smov 8  }
  0x22   : > { %s1427_s1 = sld [smem:[#allocation15_spill]]  ;;  %s981_s22 = scalar_lea.vmem %s237_s14, 2048 }
  0x23   : > { %p982_p1 = scmp.ne.s32.totalorder %s237_s14, %s981_s22  ;;  %p989_p2 = scmp.lt.s32.totalorder %s237_s14, %s237_s14 }
  0x24   : > { %p990_p6 = scmp.lt.s32.totalorder %s981_s22, %s981_s22 }
  0x25   : > { %p984_p13 = pnand %p982_p1, %p946_p12 }
  0x26   : > { %p991_p5 = por %p990_p6, %p989_p2 }
  0x27   : > { %p985_p0 = pneg %p984_p13 }
  0x28   : > { %880 = dma.hbm_to_vmem [thread:$0]  (!%p1222_p11), %s1427_s1, 256, %s221_s11, [#allocation6], %s1127_s18, %s1127_s18, %s1128_s19  }
  0x29   : > { %p992_p3 = pnand %p991_p5, %p985_p0 }
  0x2b   : > { %995 = shalt.err (!%p992_p3)
}
  0x2c   : > { %s1428_s3 = sld [smem:[#allocation16_spill]]  ;;  %s1007_s10 = scalar_lea.vmem %s253_s16, 2048 }
  0x2d   : > { %p1008_p10 = scmp.ne.s32.totalorder %s253_s16, %s1007_s10  ;;  %p1015_p9 = scmp.lt.s32.totalorder %s253_s16, %s253_s16 }
  0x2e   : > { %p1016_p13 = scmp.lt.s32.totalorder %s1007_s10, %s1007_s10 }
  0x2f   : > { %p1010_p7 = pnand %p1008_p10, %p946_p12 }
  0x30   : > { %p1017_p4 = por %p1016_p13, %p1015_p9 }
  0x31   : > { %p1011_p1 = pneg %p1010_p7 }
  0x32   : > { %883 = dma.hbm_to_vmem [thread:$0]  (!%p1222_p11), %s1428_s3, 2048, %s237_s14, [#allocation6], %s1127_s18, %s1127_s18, %s1128_s19  }
  0x33   : > { %p1018_p2 = pnand %p1017_p4, %p1011_p1 }
  0x35   : > { %1021 = shalt.err (!%p1018_p2)
}
  0x36   : > { %886 = dma.hbm_to_vmem [thread:$0]  (!%p1222_p11), %s1414_s5, 2048, %s253_s16, [#allocation9], %s1127_s18, %s1127_s18, %s1128_s19  }
  0x37   : > { %s1253_s14 = sadd.s32 1, %s1122_s27   ;;  %s32_s12 = sadd.s32 1, %s1118_s26 }
  0x38   : > { %s29_s15 = ssub.s32 %s1122_s27, %s1253_s14  ;;  %p39_p6 = scmp.ne.s32.totalorder %s1118_s26, %s1114_s25 }
  0x39   : > { %p30_p4 = scmp.eq.s32.totalorder %s29_s15, 0  ;;  %p40_p12 = scmp.eq.s32.totalorder %s1122_s27, 0 }
  0x3a   : > { %p898_p0 = scmp.lt.s32.totalorder %s1122_s27, 2  ;;  %p1429_p3 = scmp.eq.s32.totalorder %s1194_s28, 1 }
  0x3b   : > { %s1263_s17 = scalar_select %p30_p4, %s1118_s26, %s32_s12  }
  0x3c   : > { %p41_p5 = por %p40_p12, %p39_p6  ;;  %p1267_p10 = por %p1429_p3, %p39_p6 }
  0x3d   : > { %s269_s21 = sand.u32 1, %s1118_s26   ;;  %s732_s22 = sshll.u32 %s1122_s27, 7 }
  0x3e   : > { %s1430_s20 = scalar_select %p1267_p10, 1, 0 }
  0x3f   : > { %s731_s16 = sshll.u32 %s269_s21, 3  ;;  %s1276_s23 = scalar_lea.hbm %s1409_s0, %s732_s22 }
  0x40   : > { %s273_s29 = scalar_lea.vmem [#allocation2], %s731_s16  ;;  %p1278_p11 = pnand %p898_p0, %p41_p5 }
  0x41   : > { %s280_s10 = sshll.u32 %s273_s29, 4  ;;  %s270_s13 = scalar_lea.sflag [#allocation3], %s269_s21  ;;  %s281_s10 = int_to_ptr.vmem [resolvable:$true] %s280_s10 }
  0x42   : > { %s1022_s15 = scalar_lea.hbm %s1276_s23, 128  ;;  %p1024_p1 = pneg %p1278_p11 }
  0x43   : > { %p1023_p7 = scmp.ne.s32.totalorder %s1276_s23, %s1022_s15  ;;  %s1027_s18 = scalar_lea.hbm %s1409_s0, 256 }
  0x44   : > { %p1028_p2 = scmp.lt.s32.totalorder %s1276_s23, %s1409_s0  ;;  %p1029_p4 = scmp.lt.s32.totalorder %s1027_s18, %s1022_s15 }
  0x45   : > { %p1025_p9 = pnand %p1024_p1, %p1023_p7 }
  0x46   : > { %p1030_p6 = por %p1029_p4, %p1028_p2 }
  0x47   : > { %p1026_p13 = pneg %p1025_p9 }
  0x49   : > { %p1031_p12 = pnand %p1030_p6, %p1026_p13 }
  0x4b   : > { %1034 = shalt.err (!%p1031_p12)
}
  0x4c   : > { %s1035_s29 = scalar_lea.vmem %s281_s10, 128  ;;  %s1129_s21 = smov [#allocation2]  }
  0x4d   : > { %p1036_p0 = scmp.ne.s32.totalorder %s281_s10, %s1035_s29  ;;  %s1040_s1 = sshll.u32 %s1129_s21, 4  ;;  %s1041_s1 = int_to_ptr.vmem [resolvable:$false] %s1040_s1 }
  0x4e   : > { %s1042_s3 = scalar_lea.vmem %s1041_s1, 256  ;;  %p1043_p7 = scmp.lt.s32.totalorder %s281_s10, %s1041_s1 }
  0x4f   : > { %p1038_p5 = pnand %p1036_p0, %p1024_p1  ;;  %p1044_p9 = scmp.lt.s32.totalorder %s1042_s3, %s1035_s29 }
  0x51   : > { %p1039_p3 = pneg %p1038_p5  ;;  %p1045_p10 = por %p1044_p9, %p1043_p7 }
  0x53   : > { %p1046_p8 = pnand %p1045_p10, %p1039_p3 }
  0x55   : > { %1049 = shalt.err (!%p1046_p8)
}
  0x56   : > { %890 = dma.hbm_to_vmem [thread:$0]  (!%p1278_p11), %s1276_s23, 128, %s281_s10, %s270_s13  }
  0x57   : > { %p1432_p13 = scmp.ne.s32.totalorder %s1425_s9, 0 }
  0x58   : > { %s1299_s15 = sand.u32 (!%p1432_p13), 1, %s1114_s25   ;;  %p1433_p10 = scmp.ne.s32.totalorder (!%p1432_p13), %s1423_s30, 0 }
  0x59   : > { %289 = sbr.rel (%p1432_p13) target bundleno = 723 (0x2d3), region = 48  ;;  %s734_s12 = sshll.u32 (!%p1432_p13), %s1299_s15, 3 }
  0x5a   : > { %s292_s1 = scalar_lea.sflag (!%p1432_p13), [#allocation3], %s1299_s15  ;;  %s295_s3 = scalar_lea.vmem (!%p1432_p13), [#allocation2], %s734_s12 }
  0x5e   : > { %1093 = dma.done.wait (%p1433_p10), %s292_s1, 128  }
  0x5f   : > { %1095 = vsyncadd (%p1433_p10), %s292_s1, 4294967168  ;;  %p1434_p8 = scmp.eq.s32.totalorder %s1194_s28, 0 }
  0x61   : > { %1097 = dma.done.wait (%p1434_p8), [#allocation6], 2304   ;;  %p1435_p11 = pmov %p1434_p8 }
  0x62   : > { %p1436_p1 = pmov %p1434_p8 }
  0x63   : > { %1099 = vsyncadd (%p1435_p11), [#allocation6], 4294964992 }
  0x64   : > { %1101 = dma.done.wait (%p1436_p1), [#allocation9], 2048   ;;  %p1437_p2 = pmov %p1436_p1 }
  0x65   : > { %v1130_v0 = vmov 0.0   ;;  %vm1131_vm0 = vmmov 0   ;;  %v340_v1 = vld [vmem:[#allocation5 + $0x8] sm:$0xff]  ;;  %v339_v2 = vld [vmem:[#allocation5] sm:$0xff]  ;;  %v338_v3 = vld [vmem:[%s295_s3] sm:$0xff]  ;;  %vm348_vm1 = vcmask 130048  }
  0x66   : > { %1103 = vsyncadd (%p1437_p2), [#allocation9], 4294965248  ;;  %784 = vmatprep.subr.mxu0 %v1130_v0  ;;  %788 = vmatprep.mubr.msk.f32.mxu0 %vm1131_vm0, %v1130_v0  ;;  %v438_v4 = vld [vmem:[#allocation7 + $0x78] sm:$0xff]  ;;  %v437_v5 = vld [vmem:[#allocation7 + $0x70] sm:$0xff]  ;;  %s744_s22 = sshll.u32 %s1194_s28, 7  ;;  %s337_s18 = scalar_lea.vmem [#allocation10], %s734_s12 }
  0x67   : > { %791 = vmatprep.subr.mxu1 %v1130_v0  ;;  %823 = vmatprep.mubr.msk.f32.mxu1 %vm1131_vm0, %v1130_v0  ;;  %v436_v6 = vld [vmem:[#allocation7 + $0x68] sm:$0xff]  ;;  %v435_v7 = vld [vmem:[#allocation7 + $0x60] sm:$0xff]  ;;  %v434_v8 = vld [vmem:[#allocation7 + $0x58] sm:$0xff]  ;;  %s626_s19 = sshll.u32 %s337_s18, 4  ;;  %s1372_s21 = scalar_lea.hbm %s1416_s7, %s744_s22  ;;  %s627_s19 = int_to_ptr.vmem [resolvable:$true] %s626_s19 }
  0x68   : > { %785 = vmatpush3.msra.mxu0 %v340_v1  ;;  %792 = vmatpush3.msra.mxu1 %v438_v4  ;;  %v433_v9 = vld [vmem:[#allocation7 + $0x50] sm:$0xff]  ;;  %v432_v10 = vld [vmem:[#allocation7 + $0x48] sm:$0xff]  ;;  %v431_v11 = vld [vmem:[#allocation7 + $0x40] sm:$0xff]  ;;  %s613_s1 = scalar_lea.sflag [#allocation4], %s1299_s15  ;;  %s1050_s3 = scalar_lea.vmem %s627_s19, 128 }
  0x69   : > { %786 = vmatprep.subr.mxu0 %v1130_v0  ;;  %793 = vmatprep.subr.mxu1 %v1130_v0  ;;  %v430_v12 = vld [vmem:[#allocation7 + $0x38] sm:$0xff]  ;;  %v429_v13 = vld [vmem:[#allocation7 + $0x30] sm:$0xff]  ;;  %v428_v14 = vld [vmem:[#allocation7 + $0x28] sm:$0xff]  ;;  %p1051_p4 = scmp.ne.s32.totalorder %s627_s19, %s1050_s3  ;;  %p1438_p6 = scmp.ne.s32.totalorder %s1430_s20, 0 }
  0x6a   : > { %787 = vmatpush3.msra.mxu0 %v339_v2  ;;  %794 = vmatpush3.msra.mxu1 %v437_v5  ;;  %v427_v15 = vld [vmem:[#allocation7 + $0x20] sm:$0xff]  ;;  %v426_v16 = vld [vmem:[#allocation7 + $0x18] sm:$0xff]  ;;  %v425_v17 = vld [vmem:[#allocation7 + $0x10] sm:$0xff]  ;;  %s1132_s30 = smov [#allocation10]  }
  0x6b   : > { %789 = vmatmul.mubr.msk.f32.vlgmr.msra.gmra.mxu0 %vm348_vm1, %v338_v3  ;;  %795 = vmatprep.subr.mxu1 %v1130_v0  ;;  %v424_v18 = vld [vmem:[#allocation7 + $0x8] sm:$0xff]  ;;  %v423_v19 = vld [vmem:[#allocation7] sm:$0xff]  ;;  %v532_v20 = vld [vmem:[#allocation8 + $0x78] sm:$0xff]  ;;  %p1052_p12 = pnand %p1051_p4, %p1438_p6  ;;  %s1054_s9 = sshll.u32 %s1132_s30, 4  ;;  %s1055_s9 = int_to_ptr.vmem [resolvable:$false] %s1054_s9 }
  0x6c   : > { %826 = vmatprep.subr.mxu0 %v1130_v0  ;;  %796 = vmatpush3.msra.mxu1 %v436_v6  ;;  %v531_v21 = vld [vmem:[#allocation8 + $0x70] sm:$0xff]  ;;  %v530_v22 = vld [vmem:[#allocation8 + $0x68] sm:$0xff]  ;;  %v529_v23 = vld [vmem:[#allocation8 + $0x60] sm:$0xff]  ;;  %s1056_s28 = scalar_lea.vmem %s1055_s9, 256  ;;  %p1057_p5 = scmp.lt.s32.totalorder %s627_s19, %s1055_s9 }
  0x6d   : > { %858 = vmatprep.mubr.msk.f32.mxu0 %vm1131_vm0, %v1130_v0  ;;  %797 = vmatprep.subr.mxu1 %v1130_v0  ;;  %v528_v24 = vld [vmem:[#allocation8 + $0x58] sm:$0xff]  ;;  %v527_v25 = vld [vmem:[#allocation8 + $0x50] sm:$0xff]  ;;  %v526_v26 = vld [vmem:[#allocation8 + $0x48] sm:$0xff]  ;;  %p1053_p0 = pneg %p1052_p12  ;;  %p1058_p3 = scmp.lt.s32.totalorder %s1056_s28, %s1050_s3 }
  0x6e   : > { %798 = vmatpush3.msra.mxu1 %v435_v7  ;;  %827 = vmatpush3.msra.mxu0 %v532_v20  ;;  %v525_v27 = vld [vmem:[#allocation8 + $0x40] sm:$0xff]  ;;  %v524_v28 = vld [vmem:[#allocation8 + $0x38] sm:$0xff]  ;;  %v523_v29 = vld [vmem:[#allocation8 + $0x30] sm:$0xff] }
  0x6f   : > { %799 = vmatprep.subr.mxu1 %v1130_v0  ;;  %828 = vmatprep.subr.mxu0 %v1130_v0  ;;  %v522_v30 = vld [vmem:[#allocation8 + $0x28] sm:$0xff]  ;;  %v521_v31 = vld [vmem:[#allocation8 + $0x20] sm:$0xff]  ;;  %v520_v32 = vld [vmem:[#allocation8 + $0x18] sm:$0xff]  ;;  %p1059_p7 = por %p1058_p3, %p1057_p5 }
  0x70   : > { %800 = vmatpush3.msra.mxu1 %v434_v8  ;;  %829 = vmatpush3.msra.mxu0 %v531_v21  ;;  %v739_v33 = vld [vmem:[%s1411_s2] ss:$0 sm:$0xff]  ;;  %v519_v38 = vld [vmem:[#allocation8 + $0x10] sm:$0xff]  ;;  %v518_v39 = vld [vmem:[#allocation8 + $0x8] sm:$0xff] }
  0x71   : > { %801 = vmatprep.subr.mxu1 %v1130_v0  ;;  %830 = vmatprep.subr.mxu0 %v1130_v0  ;;  %v517_v40 = vld [vmem:[#allocation8] sm:$0xff]  ;;  %p1060_p9 = pnand %p1059_p7, %p1053_p0 }
  0x72   : > { %802 = vmatpush3.msra.mxu1 %v433_v9  ;;  %831 = vmatpush3.msra.mxu0 %v530_v22  ;;  %v741_v41 = vld [vmem:[%s1413_s4] ss:$0 sm:$0xff] }
  0x73   : > { %803 = vmatprep.subr.mxu1 %v1130_v0  ;;  %832 = vmatprep.subr.mxu0 %v1130_v0  ;;  %v742_v46 = vld [vmem:[%s1415_s6] ss:$0 sm:$0xff] }
  0x74   : > { %804 = vmatpush3.msra.mxu1 %v432_v10  ;;  %833 = vmatpush3.msra.mxu0 %v529_v23 }
  0x75   : > { %805 = vmatprep.subr.mxu1 %v1130_v0  ;;  %834 = vmatprep.subr.mxu0 %v1130_v0 }
  0x76   : > { %806 = vmatpush3.msra.mxu1 %v431_v11  ;;  %835 = vmatpush3.msra.mxu0 %v528_v24 }
  0x77   : > { %807 = vmatprep.subr.mxu1 %v1130_v0  ;;  %836 = vmatprep.subr.mxu0 %v1130_v0 }
  0x78   : > { %808 = vmatpush3.msra.mxu1 %v430_v12  ;;  %837 = vmatpush3.msra.mxu0 %v527_v25 }
  0x79   : > { %809 = vmatprep.subr.mxu1 %v1130_v0  ;;  %838 = vmatprep.subr.mxu0 %v1130_v0 }
  0x7a   : > { %810 = vmatpush3.msra.mxu1 %v429_v13  ;;  %839 = vmatpush3.msra.mxu0 %v526_v26 }
  0x7b   : > { %811 = vmatprep.subr.mxu1 %v1130_v0  ;;  %840 = vmatprep.subr.mxu0 %v1130_v0 }
  0x7c   : > { %812 = vmatpush3.msra.mxu1 %v428_v14  ;;  %841 = vmatpush3.msra.mxu0 %v525_v27 }
  0x7d   : > { %813 = vmatprep.subr.mxu1 %v1130_v0  ;;  %842 = vmatprep.subr.mxu0 %v1130_v0 }
  0x7e   : > { %814 = vmatpush3.msra.mxu1 %v427_v15  ;;  %843 = vmatpush3.msra.mxu0 %v524_v28 }
  0x7f   : > { %815 = vmatprep.subr.mxu1 %v1130_v0  ;;  %844 = vmatprep.subr.mxu0 %v1130_v0 }
  0x80   : > { %816 = vmatpush3.msra.mxu1 %v426_v16  ;;  %845 = vmatpush3.msra.mxu0 %v523_v29 }
  0x81   : > { %817 = vmatprep.subr.mxu1 %v1130_v0  ;;  %846 = vmatprep.subr.mxu0 %v1130_v0 }
  0x82   : > { %818 = vmatpush3.msra.mxu1 %v425_v17  ;;  %847 = vmatpush3.msra.mxu0 %v522_v30 }
  0x83   : > { %819 = vmatprep.subr.mxu1 %v1130_v0  ;;  %848 = vmatprep.subr.mxu0 %v1130_v0 }
  0x84   : > { %820 = vmatpush3.msra.mxu1 %v424_v18  ;;  %849 = vmatpush3.msra.mxu0 %v521_v31 }
  0x85   : > { %821 = vmatprep.subr.mxu1 %v1130_v0  ;;  %850 = vmatprep.subr.mxu0 %v1130_v0 }
  0x86   : > { %822 = vmatpush3.msra.mxu1 %v423_v19  ;;  %851 = vmatpush3.msra.mxu0 %v520_v32 }
  0x87   : > { %852 = vmatprep.subr.mxu0 %v1130_v0 }
  0x88   : > { %853 = vmatpush3.msra.mxu0 %v519_v38 }
  0x89   : > { %854 = vmatprep.subr.mxu0 %v1130_v0 }
  0x8a   : > { %855 = vmatpush3.msra.mxu0 %v518_v39 }
  0x8b   : > { %856 = vmatprep.subr.mxu0 %v1130_v0 }
  0x8c   : > { %857 = vmatpush3.msra.mxu0 %v517_v40 }
 0x12b   : > { %v418_v34 = vpop.f32.mrf.mxu0 }
 0x12c   : > { %v419_v35 = vadd.f32 %v739_v33, %v418_v34 }
 0x12d   : > { %v790_v36 = vpop.f32.mrf.mxu0 }
 0x12e   : > { %v422_v37 = vmax.f32 %v419_v35, 0.0 }
 0x130   : > { %824 = vmatmul.mubr.f32.vlgmr.msra.gmra.mxu1 %v422_v37 }
 0x1f0   : > { %v512_v42 = vpop.f32.mrf.mxu1 }
 0x1f1   : > { %v513_v43 = vadd.f32 %v741_v41, %v512_v42 }
 0x1f2   : > { %v825_v44 = vpop.f32.mrf.mxu1 }
 0x1f3   : > { %v516_v45 = vmax.f32 %v513_v43, 0.0 }
 0x1f5   : > { %859 = vmatmul.mubr.f32.vlgmr.msra.gmra.mxu0 %v516_v45 }
 0x2b5   : > { %v606_v47 = vpop.f32.mrf.mxu0 }
 0x2b6   : > { %v607_v48 = vadd.f32 %v742_v46, %v606_v47 }
 0x2b7   : > { %v860_v49 = vpop.f32.mrf.mxu0 }
 0x2b8   : > { %942 = vtanh.f32 %v607_v48 }
 0x2c5   : > { %v943_v50 = vpop.eup %942 }
 0x2c6   : > { %611 = vst [vmem:[%s337_s18] sm:$0xff] %v943_v50 }
 0x2c7   : > { %1063 = shalt.err (!%p1060_p9)
}
 0x2c8   : > { %s1064_s12 = scalar_lea.hbm %s1372_s21, 128  ;;  %s1068_s10 = scalar_lea.hbm %s1416_s7, 256 }
 0x2c9   : > { %p1065_p13 = scmp.ne.s32.totalorder %s1372_s21, %s1064_s12  ;;  %p1069_p11 = scmp.lt.s32.totalorder %s1372_s21, %s1416_s7 }
 0x2ca   : > { %p1070_p1 = scmp.lt.s32.totalorder %s1068_s10, %s1064_s12 }
 0x2cb   : > { %p1066_p10 = pnand %p1065_p13, %p1438_p6 }
 0x2cc   : > { %p1071_p2 = por %p1070_p1, %p1069_p11 }
 0x2cd   : > { %p1067_p8 = pneg %p1066_p10 }
 0x2cf   : > { %p1072_p4 = pnand %p1071_p2, %p1067_p8 }
 0x2d1   : > { %1075 = shalt.err (!%p1072_p4)
}
 0x2d2   : > { %875 = dma.vmem_to_hbm [thread:$0]  (%p1438_p6), %s627_s19, 128, %s1372_s21, %s613_s1  }
 0x2d3 PF: > { %s638_s22 = sand.u32 1, %s1110_s24   ;;  %p1439_p12 = scmp.ne.s32.totalorder %s1424_s8, 0 }
 0x2d4   : > { %p1440_p0 = scmp.ge.s32.totalorder %s1122_s27, 2  ;;  %s639_s18 = scalar_lea.sflag [#allocation4], %s638_s22 }
 0x2d6   : > { %p892_p5 = pnand %p1440_p0, %p1439_p12 }
 0x2d8   : > { %p893_p3 = pneg %p892_p5 }
 0x2da   : > { %1105 = dma.done.wait (%p893_p3), %s639_s18, 128  }
 0x2db   : > { %1107 = vsyncadd (%p893_p3), %s639_s18, 4294967168  ;;  %p22_p7 = scmp.ge.s32.totalorder %s1253_s14, 4   ;;  %s1441_s24 = smov %s1114_s25 }
 0x2dc   : > { %s1442_s25 = smov %s1118_s26  ;;  %s1443_s26 = smov %s1263_s17 }
 0x2dd   : > { %s1444_s27 = smov %s1253_s14  ;;  %24 = sbr.rel (!%p22_p7) target bundleno = 10 (0xa), region = 105 }
 0x2e2   :  { %644 = vsyncpa [#allocation3], 1 }
 0x2e3   :  { %646 = vsyncpa [#allocation3 + $0x1], 1 }
 0x2e4   :  { %647 = vsyncpa [#allocation6], 1 }
 0x2e5   :  { %648 = vsyncpa [#allocation9], 1 }
 0x2e6   :  { %649 = vsyncpa [#allocation4], 1 }
 0x2e7   :  { %651 = vsyncpa [#allocation4 + $0x1], 1 }

</bundles_post_ra>
